<compile_context>
chip_gen: v7x
topology: tpu7x:2x2x1
jax: 0.10.0
libtpu: 0.0.40
codegen_flags: <defaults>
</compile_context>

<pallas_src>
import functools

import jax
import jax.numpy as jnp
from jax.experimental import pallas as pl
from jax.experimental.pallas import tpu as pltpu


def _hardswish(x):
    # nn.Hardswish: x * relu6(x + 3) / 6
    return x * jnp.clip(x + 3.0, 0.0, 6.0) * (1.0 / 6.0)


def _round_up(v, m):
    return (v + m - 1) // m * m


def _tile_target_bytes():
    # ~4 MiB blocks on 64 MiB-VMEM parts (v7x), ~8 MiB on 128 MiB parts.
    cap = 64 << 20
    try:
        cap = int(getattr(pltpu.get_tpu_info(), "vmem_capacity_bytes", cap))
    except Exception:
        pass
    return (4 << 20) if cap <= (64 << 20) else (8 << 20)


def _pick_tiles(n, c, hw, itemsize, target_bytes):
    """Returns (nb, ts, n_tiles): batches per block, spatial tile, #spatial tiles."""
    per_batch = c * hw * itemsize
    if per_batch >= target_bytes and hw > 128:
        # One batch per block; tile the lane (spatial) axis in multiples of 128.
        ts = (target_bytes // (c * itemsize)) // 128 * 128
        ts = max(128, min(ts, _round_up(hw, 128)))
        if ts >= hw:
            return 1, hw, 1
        return 1, ts, pl.cdiv(hw, ts)
    # Small per-batch slab (late EfficientNet stages): keep HW whole on lanes
    # and merge batches so each grid step still moves a decent chunk.
    nb = min(n, max(1, target_bytes // max(1, per_batch)))
    return nb, hw, 1


def _vmem_limit(nbytes):
    return int(max(nbytes + (4 << 20), 24 << 20))


# ---------------------------------------------------------------------------
# Kernel 1: per-batch gate  s = sigmoid(W2 hardswish(W1 * mean_hw(x) + b1) + b2)
# ---------------------------------------------------------------------------
def _se_scale_kernel(x_ref, w1_ref, b1_ref, w2_ref, b2_ref, s_ref, acc_ref,
                     *, hw, ts, inv_hw):
    j = pl.program_id(1)

    @pl.when(j == 0)
    def _():
        acc_ref[...] = jnp.zeros_like(acc_ref)

    xt = x_ref[...].astype(jnp.float32)                         # (nb, C, ts)
    if hw % ts != 0:
        # Ragged last spatial tile: OOB lanes are not guaranteed zero -> mask.
        lane = jax.lax.broadcasted_iota(jnp.int32, xt.shape, 2)
        xt = jnp.where(lane < (hw - j * ts), xt, 0.0)
    # Lane-axis (XLU) reduction over this spatial tile: (nb, C, ts) -> (nb, C).
    acc_ref[...] += jnp.sum(xt, axis=2)

    @pl.when(j == pl.num_programs(1) - 1)
    def _():
        pooled = acc_ref[...] * inv_hw                          # (nb, C) f32
        # Tiny matmuls stay in f32 (MXU, f32 accumulation). No bf16 casts.
        # TODO(synk): pass precision=HIGHEST once confirmed on the target
        # Mosaic build; default f32 MXU precision is already well within 1e-2.
        h = jnp.dot(pooled, w1_ref[...],
                    preferred_element_type=jnp.float32) + b1_ref[...]   # (nb, R)
        h = _hardswish(h)
        g = jnp.dot(h, w2_ref[...],
                    preferred_element_type=jnp.float32) + b2_ref[...]   # (nb, C)
        s_ref[...] = jax.nn.sigmoid(g)[None]                    # (1, nb, C)


# ---------------------------------------------------------------------------
# Kernel 2: gate the activation tile-by-tile:  y = x * s[batch]
# ---------------------------------------------------------------------------
def _se_gate_kernel(x_ref, s_ref, o_ref):
    gate = s_ref[0]                                             # (nb, C) f32
    o_ref[...] = (x_ref[...].astype(jnp.float32)
                  * gate[:, :, None]).astype(o_ref.dtype)


# ---------------------------------------------------------------------------
# Public wrapper: NCHW in / NCHW out, PyTorch-equivalent semantics.
#   w1: (C, R), b1: (R,), w2: (R, C), b2: (C,)
#   (Conv2d weight[r, c, 0, 0] -> w1[c, r]; weight2[c, r, 0, 0] -> w2[r, c])
# ---------------------------------------------------------------------------
def squeeze_excitation(x_nchw, w1, b1, w2, b2, *, interpret=False):
    n, c, h, w = x_nchw.shape
    r = w1.shape[1]
    hw = h * w
    itemsize = jnp.dtype(x_nchw.dtype).itemsize

    x = x_nchw.reshape(n, c, hw)            # free, contiguous; HW on the lane axis

    target = _tile_target_bytes()
    nb, ts, n_tiles = _pick_tiles(n, c, hw, itemsize, target)
    nbb = pl.cdiv(n, nb)

    w1f = w1.astype(jnp.float32)
    w2f = w2.astype(jnp.float32)
    b1r = b1.reshape(1, r).astype(jnp.float32)
    b2r = b2.reshape(1, c).astype(jnp.float32)

    blk_x = nb * c * ts * itemsize
    w_bytes = (w1f.size + w2f.size + b1r.size + b2r.size) * 4
    gate_bytes = nb * c * 4

    # ---- kernel 1: s = per-batch gate, shape (nbb, nb, C) -------------------
    vmem_scale = 2 * blk_x + 2 * w_bytes + 3 * gate_bytes
    s = pl.pallas_call(
        functools.partial(_se_scale_kernel, hw=hw, ts=ts, inv_hw=1.0 / float(hw)),
        out_shape=jax.ShapeDtypeStruct((nbb, nb, c), jnp.float32),
        grid=(nbb, n_tiles),
        in_specs=[
            pl.BlockSpec((nb, c, ts), lambda i, j: (i, 0, j)),
            pl.BlockSpec((c, r), lambda i, j: (0, 0)),
            pl.BlockSpec((1, r), lambda i, j: (0, 0)),
            pl.BlockSpec((r, c), lambda i, j: (0, 0)),
            pl.BlockSpec((1, c), lambda i, j: (0, 0)),
        ],
        out_specs=pl.BlockSpec((1, nb, c), lambda i, j: (i, 0, 0)),
        scratch_shapes=[pltpu.VMEM((nb, c), jnp.float32)],
        compiler_params=pltpu.CompilerParams(
            dimension_semantics=("parallel", "arbitrary"),
            vmem_limit_bytes=_vmem_limit(vmem_scale)),
        interpret=interpret,
    )(x, w1f, b1r, w2f, b2r)

    # ---- kernel 2: y = x * s, tile-parallel over (batch blocks, spatial) ----
    vmem_gate = 4 * blk_x + 2 * gate_bytes
    y = pl.pallas_call(
        _se_gate_kernel,
        out_shape=jax.ShapeDtypeStruct((n, c, hw), x.dtype),
        grid=(nbb, n_tiles),
        in_specs=[
            pl.BlockSpec((nb, c, ts), lambda i, j: (i, 0, j)),
            pl.BlockSpec((1, nb, c), lambda i, j: (i, 0, 0)),
        ],
        out_specs=pl.BlockSpec((nb, c, ts), lambda i, j: (i, 0, j)),
        compiler_params=pltpu.CompilerParams(
            dimension_semantics=("parallel", "parallel"),
            vmem_limit_bytes=_vmem_limit(vmem_gate)),
        interpret=interpret,
    )(x, s)

    return y.reshape(n, c, h, w)


# ---------------------------------------------------------------------------
# Pure-JAX reference (mirrors the PyTorch module exactly, in f32).
# ---------------------------------------------------------------------------
def _reference(x_nchw, w1, b1, w2, b2):
    pooled = jnp.mean(x_nchw, axis=(2, 3))                      # (N, C)
    hdn = pooled @ w1 + b1
    hdn = hdn * jnp.clip(hdn + 3.0, 0.0, 6.0) / 6.0
    gate = jax.nn.sigmoid(hdn @ w2 + b2)                        # (N, C)
    return x_nchw * gate[:, :, None, None]


if __name__ == "__main__":
    N, C, R, H, W = 2, 32, 8, 16, 16                            # reduced_dim = C // 4
    key = jax.random.PRNGKey(0)
    kx, k1, k2, k3, k4 = jax.random.split(key, 5)
    x = jax.random.normal(kx, (N, C, H, W), jnp.float32)        # NCHW like PyTorch
    w1 = jax.random.normal(k1, (C, R), jnp.float32) * (1.0 / C) ** 0.5
    b1 = jax.random.normal(k2, (R,), jnp.float32) * 0.05
    w2 = jax.random.normal(k3, (R, C), jnp.float32) * (1.0 / R) ** 0.5
    b2 = jax.random.normal(k4, (C,), jnp.float32) * 0.05

    fwd = jax.jit(squeeze_excitation)
    y = fwd(x, w1, b1, w2, b2)
    jax.block_until_ready(y)

    y_ref = _reference(x, w1, b1, w2, b2)
    assert y.shape == x.shape
    assert bool(jnp.all(jnp.isfinite(y)))
    err = float(jnp.max(jnp.abs(y - y_ref)))
    assert bool(jnp.allclose(y, y_ref, rtol=1e-2, atol=1e-2)), err
    print("KERNEL_OK")
</pallas_src>

<mosaic_0001>
module attributes {stable_mosaic.version = 11 : i64} {
  func.func @_se_gate_kernel(%arg0: i32, %arg1: i32, %arg2: memref<2x32x256xf32, #tpu.memory_space<vmem>>, %arg3: memref<1x2x32xf32, #tpu.memory_space<vmem>>, %arg4: memref<2x32x256xf32, #tpu.memory_space<vmem>>) attributes {dimension_semantics = [#tpu.dimension_semantics<parallel>, #tpu.dimension_semantics<parallel>], iteration_bounds = array<i64: 1, 1>, scalar_prefetch = 0 : i64, scratch_operands = 0 : i64, tpu.core_type = #tpu.core_type<tc>, window_params = [{transform_indices = @transform_0, window_bounds = array<i64: 2, 32, 256>}, {transform_indices = @transform_1, window_bounds = array<i64: 1, 2, 32>}, {transform_indices = @transform_2, window_bounds = array<i64: 2, 32, 256>}]} {
    %c0 = arith.constant 0 : index
    %c0_0 = arith.constant 0 : index
    %c0_1 = arith.constant 0 : index
    %0 = vector.load %arg3[%c0, %c0_0, %c0_1] : memref<1x2x32xf32, #tpu.memory_space<vmem>>, vector<1x2x32xf32>
    %1 = vector.shape_cast %0 : vector<1x2x32xf32> to vector<2x32xf32>
    %c0_2 = arith.constant 0 : index
    %c0_3 = arith.constant 0 : index
    %c0_4 = arith.constant 0 : index
    %2 = vector.load %arg2[%c0_2, %c0_3, %c0_4] : memref<2x32x256xf32, #tpu.memory_space<vmem>>, vector<2x32x256xf32>
    %3 = vector.shape_cast %1 : vector<2x32xf32> to vector<2x32x1xf32>
    %4 = vector.broadcast %3 : vector<2x32x1xf32> to vector<2x32x256xf32>
    %5 = arith.mulf %2, %4 : vector<2x32x256xf32>
    %c0_5 = arith.constant 0 : index
    %c0_6 = arith.constant 0 : index
    %c0_7 = arith.constant 0 : index
    %6 = vector.load %arg4[%c0_5, %c0_6, %c0_7] : memref<2x32x256xf32, #tpu.memory_space<vmem>>, vector<2x32x256xf32>
    tpu.vector_store %arg4[%c0_5, %c0_6, %c0_7], %5 {strides = array<i32>} : memref<2x32x256xf32, #tpu.memory_space<vmem>>, vector<2x32x256xf32>,
    return
  }
  func.func @transform_0(%arg0: i32, %arg1: i32) -> (i32, i32, i32) {
    %c0_i32 = arith.constant 0 : i32
    %c0_i32_0 = arith.constant 0 : i32
    return %arg0, %c0_i32, %arg1 : i32, i32, i32
  }
  func.func @transform_1(%arg0: i32, %arg1: i32) -> (i32, i32, i32) {
    %c0_i32 = arith.constant 0 : i32
    %c0_i32_0 = arith.constant 0 : i32
    %c0_i32_1 = arith.constant 0 : i32
    return %arg0, %c0_i32, %c0_i32_0 : i32, i32, i32
  }
  func.func @transform_2(%arg0: i32, %arg1: i32) -> (i32, i32, i32) {
    %c0_i32 = arith.constant 0 : i32
    %c0_i32_0 = arith.constant 0 : i32
    return %arg0, %c0_i32, %arg1 : i32, i32, i32
  }
}

module attributes {stable_mosaic.version = 11 : i64} {
  func.func @_se_scale_kernel(%arg0: i32, %arg1: i32, %arg2: memref<2x32x256xf32, #tpu.memory_space<vmem>>, %arg3: memref<32x8xf32, #tpu.memory_space<vmem>>, %arg4: memref<1x8xf32, #tpu.memory_space<vmem>>, %arg5: memref<8x32xf32, #tpu.memory_space<vmem>>, %arg6: memref<1x32xf32, #tpu.memory_space<vmem>>, %arg7: memref<1x2x32xf32, #tpu.memory_space<vmem>>, %arg8: memref<2x32xf32, #tpu.memory_space<vmem>>) attributes {dimension_semantics = [#tpu.dimension_semantics<parallel>, #tpu.dimension_semantics<arbitrary>], iteration_bounds = array<i64: 1, 1>, scalar_prefetch = 0 : i64, scratch_operands = 1 : i64, tpu.core_type = #tpu.core_type<tc>, window_params = [{transform_indices = @transform_0, window_bounds = array<i64: 2, 32, 256>}, {pipeline_mode = #tpu.pipeline_mode<synchronous>, transform_indices = @transform_1, window_bounds = array<i64: 32, 8>}, {pipeline_mode = #tpu.pipeline_mode<synchronous>, transform_indices = @transform_2, window_bounds = array<i64: 1, 8>}, {pipeline_mode = #tpu.pipeline_mode<synchronous>, transform_indices = @transform_3, window_bounds = array<i64: 8, 32>}, {pipeline_mode = #tpu.pipeline_mode<synchronous>, transform_indices = @transform_4, window_bounds = array<i64: 1, 32>}, {transform_indices = @transform_5, window_bounds = array<i64: 1, 2, 32>}]} {
    %c0_i32 = arith.constant 0 : i32
    %0 = arith.cmpi eq, %arg1, %c0_i32 : i32
    %1 = arith.extui %0 : i1 to i32
    %c0_i32_0 = arith.constant 0 : i32
    %2 = arith.cmpi ne, %1, %c0_i32_0 : i32
    scf.if %2 {
      %cst_9 = arith.constant 0.000000e+00 : f32
      %11 = vector.broadcast %cst_9 : f32 to vector<2x32xf32>
      %c0_10 = arith.constant 0 : index
      %c0_11 = arith.constant 0 : index
      %12 = vector.load %arg8[%c0_10, %c0_11] : memref<2x32xf32, #tpu.memory_space<vmem>>, vector<2x32xf32>
      tpu.vector_store %arg8[%c0_10, %c0_11], %11 {strides = array<i32>} : memref<2x32xf32, #tpu.memory_space<vmem>>, vector<2x32xf32>,
    } else {
    }
    %c0 = arith.constant 0 : index
    %c0_1 = arith.constant 0 : index
    %c0_2 = arith.constant 0 : index
    %3 = vector.load %arg2[%c0, %c0_1, %c0_2] : memref<2x32x256xf32, #tpu.memory_space<vmem>>, vector<2x32x256xf32>
    %c0_3 = arith.constant 0 : index
    %c0_4 = arith.constant 0 : index
    %4 = vector.load %arg8[%c0_3, %c0_4] : memref<2x32xf32, #tpu.memory_space<vmem>>, vector<2x32xf32>
    %cst = arith.constant dense<0.000000e+00> : vector<2x32xf32>
    %5 = vector.multi_reduction <add>, %3, %cst [2] : vector<2x32x256xf32> to vector<2x32xf32>
    %6 = arith.addf %4, %5 : vector<2x32xf32>
    %c0_5 = arith.constant 0 : index
    %c0_6 = arith.constant 0 : index
    %7 = vector.load %arg8[%c0_5, %c0_6] : memref<2x32xf32, #tpu.memory_space<vmem>>, vector<2x32xf32>
    tpu.vector_store %arg8[%c0_5, %c0_6], %6 {strides = array<i32>} : memref<2x32xf32, #tpu.memory_space<vmem>>, vector<2x32xf32>,
    %c0_i32_7 = arith.constant 0 : i32
    %8 = arith.cmpi eq, %arg1, %c0_i32_7 : i32
    %9 = arith.extui %8 : i1 to i32
    %c0_i32_8 = arith.constant 0 : i32
    %10 = arith.cmpi ne, %9, %c0_i32_8 : i32
    scf.if %10 {
      %c0_9 = arith.constant 0 : index
      %c0_10 = arith.constant 0 : index
      %11 = vector.load %arg8[%c0_9, %c0_10] : memref<2x32xf32, #tpu.memory_space<vmem>>, vector<2x32xf32>
      %cst_11 = arith.constant 3.906250e-03 : f32
      %12 = vector.broadcast %cst_11 : f32 to vector<2x32xf32>
      %13 = arith.mulf %11, %12 : vector<2x32xf32>
      %c0_12 = arith.constant 0 : index
      %c0_13 = arith.constant 0 : index
      %14 = vector.load %arg3[%c0_12, %c0_13] : memref<32x8xf32, #tpu.memory_space<vmem>>, vector<32x8xf32>
      %cst_14 = arith.constant dense<0.000000e+00> : vector<2x8xf32>
      %15 = tpu.matmul %13, %14, %cst_14 {dimension_numbers = #tpu.dot_dimension_numbers<[1], [0], [0], [1], [0, 0, 1, 1], [], []>} : vector<2x32xf32>, vector<32x8xf32>, vector<2x8xf32> -> vector<2x8xf32>
      %c0_15 = arith.constant 0 : index
      %c0_16 = arith.constant 0 : index
      %16 = vector.load %arg4[%c0_15, %c0_16] : memref<1x8xf32, #tpu.memory_space<vmem>>, vector<1x8xf32>
      %17 = vector.broadcast %16 : vector<1x8xf32> to vector<2x8xf32>
      %18 = arith.addf %15, %17 : vector<2x8xf32>
      %cst_17 = arith.constant 3.000000e+00 : f32
      %19 = vector.broadcast %cst_17 : f32 to vector<2x8xf32>
      %20 = arith.addf %18, %19 : vector<2x8xf32>
      %cst_18 = arith.constant 0.000000e+00 : f32
      %cst_19 = arith.constant 6.000000e+00 : f32
      %21 = vector.broadcast %cst_18 : f32 to vector<2x8xf32>
      %22 = arith.maximumf %21, %20 : vector<2x8xf32>
      %23 = vector.broadcast %cst_19 : f32 to vector<2x8xf32>
      %24 = arith.minimumf %23, %22 : vector<2x8xf32>
      %25 = arith.mulf %18, %24 : vector<2x8xf32>
      %cst_20 = arith.constant 0.166666672 : f32
      %26 = vector.broadcast %cst_20 : f32 to vector<2x8xf32>
      %27 = arith.mulf %25, %26 : vector<2x8xf32>
      %c0_21 = arith.constant 0 : index
      %c0_22 = arith.constant 0 : index
      %28 = vector.load %arg5[%c0_21, %c0_22] : memref<8x32xf32, #tpu.memory_space<vmem>>, vector<8x32xf32>
      %cst_23 = arith.constant dense<0.000000e+00> : vector<2x32xf32>
      %29 = tpu.matmul %27, %28, %cst_23 {dimension_numbers = #tpu.dot_dimension_numbers<[1], [0], [0], [1], [0, 0, 1, 1], [], []>} : vector<2x8xf32>, vector<8x32xf32>, vector<2x32xf32> -> vector<2x32xf32>
      %c0_24 = arith.constant 0 : index
      %c0_25 = arith.constant 0 : index
      %30 = vector.load %arg6[%c0_24, %c0_25] : memref<1x32xf32, #tpu.memory_space<vmem>>, vector<1x32xf32>
      %31 = vector.broadcast %30 : vector<1x32xf32> to vector<2x32xf32>
      %32 = arith.addf %29, %31 : vector<2x32xf32>
      %33 = arith.negf %32 : vector<2x32xf32>
      %34 = math.exp %33 : vector<2x32xf32>
      %cst_26 = arith.constant 1.000000e+00 : f32
      %35 = vector.broadcast %cst_26 : f32 to vector<2x32xf32>
      %36 = arith.addf %35, %34 : vector<2x32xf32>
      %37 = arith.divf %35, %36 : vector<2x32xf32>
      %38 = vector.shape_cast %37 : vector<2x32xf32> to vector<1x2x32xf32>
      %c0_27 = arith.constant 0 : index
      %c0_28 = arith.constant 0 : index
      %c0_29 = arith.constant 0 : index
      %39 = vector.load %arg7[%c0_27, %c0_28, %c0_29] : memref<1x2x32xf32, #tpu.memory_space<vmem>>, vector<1x2x32xf32>
      tpu.vector_store %arg7[%c0_27, %c0_28, %c0_29], %38 {strides = array<i32>} : memref<1x2x32xf32, #tpu.memory_space<vmem>>, vector<1x2x32xf32>,
    } else {
    }
    return
  }
  func.func @transform_0(%arg0: i32, %arg1: i32) -> (i32, i32, i32) {
    %c0_i32 = arith.constant 0 : i32
    %c0_i32_0 = arith.constant 0 : i32
    return %arg0, %c0_i32, %arg1 : i32, i32, i32
  }
  func.func @transform_1(%arg0: i32, %arg1: i32) -> (i32, i32) {
    %c0_i32 = arith.constant 0 : i32
    %c0_i32_0 = arith.constant 0 : i32
    %c0_i32_1 = arith.constant 0 : i32
    return %c0_i32, %c0_i32_0 : i32, i32
  }
  func.func @transform_2(%arg0: i32, %arg1: i32) -> (i32, i32) {
    %c0_i32 = arith.constant 0 : i32
    %c0_i32_0 = arith.constant 0 : i32
    %c0_i32_1 = arith.constant 0 : i32
    return %c0_i32, %c0_i32_0 : i32, i32
  }
  func.func @transform_3(%arg0: i32, %arg1: i32) -> (i32, i32) {
    %c0_i32 = arith.constant 0 : i32
    %c0_i32_0 = arith.constant 0 : i32
    %c0_i32_1 = arith.constant 0 : i32
    return %c0_i32, %c0_i32_0 : i32, i32
  }
  func.func @transform_4(%arg0: i32, %arg1: i32) -> (i32, i32) {
    %c0_i32 = arith.constant 0 : i32
    %c0_i32_0 = arith.constant 0 : i32
    %c0_i32_1 = arith.constant 0 : i32
    return %c0_i32, %c0_i32_0 : i32, i32
  }
  func.func @transform_5(%arg0: i32, %arg1: i32) -> (i32, i32, i32) {
    %c0_i32 = arith.constant 0 : i32
    %c0_i32_0 = arith.constant 0 : i32
    %c0_i32_1 = arith.constant 0 : i32
    return %arg0, %c0_i32, %c0_i32_0 : i32, i32, i32
  }
}

</mosaic_0001>

<bundles_post_ra>
// kernel: squeeze_excitation.3
= control target key start
LH: loop header
LB: loop body
LE: loop exit
PB: predicated region body
PF: predicated region fallthrough
CT: control target
= control target key end

     0   :  { %v28_v0 = vlaneseq  ;;  %s216_s1 = inlined_call_operand.vmem [shape: f32[1,2,32], index: 1, kind: input, shape index: {}]   ;;  %s217_s0 = inlined_call_operand.vmem [shape: f32[2,32,256], index: 0, kind: input, shape index: {}]   ;;  %s218_s2 = inlined_call_operand.vmem [shape: f32[2,32,256], index: 2, kind: output, shape index: {}]  }
   0x1   :  { %v11_v2 = vld [vmem:[%s216_s1] sm:$0x3]  ;;  %v17_v8 = vld [vmem:[%s217_s0 + $0x28] sm:$0xff]  ;;  %v18_v17 = vld [vmem:[%s217_s0 + $0x30] sm:$0xff] }
   0x2   :  { %v29_v1 = vshrl.u32 %v28_v0, 7  ;;  %v16_v7 = vld [vmem:[%s217_s0 + $0x20] sm:$0xff]  ;;  %v13_v10 = vld [vmem:[%s217_s0 + $0x8] sm:$0xff]  ;;  %v19_v18 = vld [vmem:[%s217_s0 + $0x38] sm:$0xff] }
   0x3   :  { %v12_v9 = vld [vmem:[%s217_s0] sm:$0xff]  ;;  %v14_v19 = vld [vmem:[%s217_s0 + $0x10] sm:$0xff]  ;;  %v15_v20 = vld [vmem:[%s217_s0 + $0x18] sm:$0xff] }
   0x4   :  { %v30_v3 = vsub.s32 0, %v29_v1  ;;  %v49_v5 = vsub.s32 1, %v29_v1  ;;  %v22_v27 = vld [vmem:[%s217_s0 + $0x50] sm:$0xff]  ;;  %v23_v28 = vld [vmem:[%s217_s0 + $0x58] sm:$0xff]  ;;  %v20_v29 = vld [vmem:[%s217_s0 + $0x40] sm:$0xff] }
   0x5   :  { %v21_v30 = vld [vmem:[%s217_s0 + $0x48] sm:$0xff]  ;;  %v26_v37 = vld [vmem:[%s217_s0 + $0x70] sm:$0xff]  ;;  %v27_v38 = vld [vmem:[%s217_s0 + $0x78] sm:$0xff] }
   0x6   :  { %v31_v4 = vrot.slane %v11_v2, %v30_v3  ;;  %v50_v6 = vrot.slane %v11_v2, %v49_v5  ;;  %v24_v39 = vld [vmem:[%s217_s0 + $0x60] sm:$0xff]  ;;  %v25_v40 = vld [vmem:[%s217_s0 + $0x68] sm:$0xff] }
   0x8   :  { %41 = vbcast.lane.b32.xlu1 %v31_v4, 272  ;;  %33 = vbcast.lane.b32.xlu0 %v31_v4, 256 }
   0xc   :  { %45 = vbcast.lane.b32.xlu1 %v31_v4, 280  ;;  %37 = vbcast.lane.b32.xlu0 %v31_v4, 264 }
  0x10   :  { %56 = vbcast.lane.b32.xlu1 %v50_v6, 264  ;;  %52 = vbcast.lane.b32.xlu0 %v50_v6, 256 }
  0x14   :  { %64 = vbcast.lane.b32.xlu1 %v50_v6, 280  ;;  %60 = vbcast.lane.b32.xlu0 %v50_v6, 272 }
  0x7a   :  { %v42_v11 = vpop.permute.xlu1 %41  ;;  %v34_v12 = vpop.permute.xlu0 %33 }
  0x7b   :  { %v70_v13 = vmul.f32 %v42_v11, %v16_v7  ;;  %v71_v14 = vmul.f32 %v42_v11, %v17_v8  ;;  %v66_v15 = vmul.f32 %v34_v12, %v12_v9  ;;  %v67_v16 = vmul.f32 %v34_v12, %v13_v10 }
  0x7d   :  { %86 = vst [vmem:[%s218_s2 + $0x20] sm:$0xff] %v70_v13  ;;  %87 = vst [vmem:[%s218_s2 + $0x28] sm:$0xff] %v71_v14 }
  0x7e   :  { %82 = vst [vmem:[%s218_s2] sm:$0xff] %v66_v15  ;;  %83 = vst [vmem:[%s218_s2 + $0x8] sm:$0xff] %v67_v16  ;;  %v46_v21 = vpop.permute.xlu1 %45  ;;  %v38_v22 = vpop.permute.xlu0 %37 }
  0x7f   :  { %v72_v23 = vmul.f32 %v46_v21, %v18_v17  ;;  %v73_v24 = vmul.f32 %v46_v21, %v19_v18  ;;  %v68_v25 = vmul.f32 %v38_v22, %v14_v19  ;;  %v69_v26 = vmul.f32 %v38_v22, %v15_v20 }
  0x81   :  { %88 = vst [vmem:[%s218_s2 + $0x30] sm:$0xff] %v72_v23  ;;  %89 = vst [vmem:[%s218_s2 + $0x38] sm:$0xff] %v73_v24 }
  0x82   :  { %84 = vst [vmem:[%s218_s2 + $0x10] sm:$0xff] %v68_v25  ;;  %85 = vst [vmem:[%s218_s2 + $0x18] sm:$0xff] %v69_v26  ;;  %v57_v31 = vpop.permute.xlu1 %56  ;;  %v53_v32 = vpop.permute.xlu0 %52 }
  0x83   :  { %v76_v33 = vmul.f32 %v57_v31, %v22_v27  ;;  %v77_v34 = vmul.f32 %v57_v31, %v23_v28  ;;  %v74_v35 = vmul.f32 %v53_v32, %v20_v29  ;;  %v75_v36 = vmul.f32 %v53_v32, %v21_v30 }
  0x85   :  { %92 = vst [vmem:[%s218_s2 + $0x50] sm:$0xff] %v76_v33  ;;  %93 = vst [vmem:[%s218_s2 + $0x58] sm:$0xff] %v77_v34 }
  0x86   :  { %90 = vst [vmem:[%s218_s2 + $0x40] sm:$0xff] %v74_v35  ;;  %91 = vst [vmem:[%s218_s2 + $0x48] sm:$0xff] %v75_v36  ;;  %v65_v41 = vpop.permute.xlu1 %64  ;;  %v61_v42 = vpop.permute.xlu0 %60 }
  0x87   :  { %v80_v43 = vmul.f32 %v65_v41, %v26_v37  ;;  %v81_v44 = vmul.f32 %v65_v41, %v27_v38  ;;  %v78_v45 = vmul.f32 %v61_v42, %v24_v39  ;;  %v79_v46 = vmul.f32 %v61_v42, %v25_v40 }
  0x89   :  { %96 = vst [vmem:[%s218_s2 + $0x70] sm:$0xff] %v80_v43  ;;  %97 = vst [vmem:[%s218_s2 + $0x78] sm:$0xff] %v81_v44 }
  0x8a   :  { %94 = vst [vmem:[%s218_s2 + $0x60] sm:$0xff] %v78_v45  ;;  %95 = vst [vmem:[%s218_s2 + $0x68] sm:$0xff] %v79_v46 }

// kernel: squeeze_excitation.2
= control target key start
LH: loop header
LB: loop body
LE: loop exit
PB: predicated region body
PF: predicated region fallthrough
CT: control target
= control target key end

     0   :  { %vm24_vm0 = vcmask 254976   ;;  %v356_v24 = vmov 0.0   ;;  %v357_v25 = vmov 0.0|0.0   ;;  %vm358_vm1 = vmmov 0   ;;  %s464_s0 = inlined_call_operand.vmem [shape: f32[2,32,256], index: 0, kind: input, shape index: {}]   ;;  %s465_s1 = inlined_call_operand.vmem [shape: f32[32,8], index: 1, kind: input, shape index: {}]   ;;  %s466_s3 = inlined_call_operand.vmem [shape: f32[8,32], index: 3, kind: input, shape index: {}]   ;;  %s467_s2 = inlined_call_operand.vmem [shape: f32[1,8], index: 2, kind: input, shape index: {}]   ;;  %s468_s4 = inlined_call_operand.vmem [shape: f32[1,32], index: 4, kind: input, shape index: {}]   ;;  %s469_s5 = inlined_call_operand.vmem [shape: f32[1,2,32], index: 5, kind: output, shape index: {}]  }
   0x1   :  { %v34_v0 = vld [vmem:[%s464_s0 + $0x40] sm:$0xff]  ;;  %v35_v1 = vld [vmem:[%s464_s0 + $0x48] sm:$0xff]  ;;  %v36_v5 = vld [vmem:[%s464_s0 + $0x50] sm:$0xff]  ;;  %25 = vst.msk [vmem:[#allocation2] sm:$0x3] %vm24_vm0, %v356_v24  ;;  %338 = vmatprep.subr.mxu1 %v356_v24  ;;  %343 = vmatprep.subr.bf16.mxu0 %v357_v25  ;;  %v75_v32 = vlaneseq  ;;  %vm86_vm2 = vcmask 130112  }
   0x2   :  { %v26_v2 = vld [vmem:[%s464_s0] sm:$0xff]  ;;  %v55_v3 = vadd.f32 %v35_v1, %v34_v0  ;;  %v27_v4 = vld [vmem:[%s464_s0 + $0x8] sm:$0xff]  ;;  %v37_v6 = vld [vmem:[%s464_s0 + $0x58] sm:$0xff]  ;;  %335 = vmatprep.mubr.msk.f32.mxu0 %vm358_vm1, %v356_v24  ;;  %340 = vmatprep.mubr.msk.f32.mxu1 %vm358_vm1, %v356_v24  ;;  %vm93_vm3 = vcmask 195712   ;;  %vm100_vm4 = vcmask 261312   ;;  %vm121_vm5 = vcmask 1041409  }
   0x3   :  { %v43_v7 = vadd.f32 %v27_v4, %v26_v2  ;;  %v28_v8 = vld [vmem:[%s464_s0 + $0x10] sm:$0xff]  ;;  %v29_v9 = vld [vmem:[%s464_s0 + $0x18] sm:$0xff]  ;;  %v58_v10 = vadd.f32 %v37_v6, %v36_v5  ;;  %v38_v12 = vld [vmem:[%s464_s0 + $0x60] sm:$0xff]  ;;  %v76_v33 = vand.u32 127, %v75_v32  ;;  %v78_v38 = vshrl.u32 %v75_v32, 7 }
   0x4   :  { %56 = vadd.xlane.f32.xlu1 %v55_v3  ;;  %v46_v11 = vadd.f32 %v29_v9, %v28_v8  ;;  %v39_v13 = vld [vmem:[%s464_s0 + $0x68] sm:$0xff]  ;;  %v30_v14 = vld [vmem:[%s464_s0 + $0x20] sm:$0xff]  ;;  %v40_v18 = vld [vmem:[%s464_s0 + $0x70] sm:$0xff]  ;;  %vm143_vm6 = vcmask 261120   ;;  %vm230_vm7 = vcmask 64512  }
   0x5   :  { %44 = vadd.xlane.f32.xlu0 %v43_v7  ;;  %v31_v15 = vld [vmem:[%s464_s0 + $0x28] sm:$0xff]  ;;  %v61_v16 = vadd.f32 %v39_v13, %v38_v12  ;;  %v41_v19 = vld [vmem:[%s464_s0 + $0x78] sm:$0xff]  ;;  %v32_v20 = vld [vmem:[%s464_s0 + $0x30] sm:$0xff]  ;;  %v81_v36 = vadd.s32 4294967288, %v76_v33  ;;  %v88_v37 = vadd.s32 4294967280, %v76_v33  ;;  %v95_v42 = vadd.s32 4294967272, %v76_v33 }
   0x6   :  { %v49_v17 = vadd.f32 %v31_v15, %v30_v14  ;;  %v33_v21 = vld [vmem:[%s464_s0 + $0x38] sm:$0xff]  ;;  %v64_v22 = vadd.f32 %v41_v19, %v40_v18  ;;  %v132_v26 = vld [vmem:[%s465_s1] sm:$0xff]  ;;  %v133_v27 = vld [vmem:[%s465_s1 + $0x8] sm:$0xff]  ;;  %v79_v44 = vsub.s32 %v76_v33, %v78_v38 }
   0x7   :  { %v52_v23 = vadd.f32 %v33_v21, %v32_v20  ;;  %v134_v28 = vld [vmem:[%s465_s1 + $0x10] sm:$0xff]  ;;  %v344_v29 = vpack.c.bf16 %v133_v27, %v132_v26  ;;  %v135_v30 = vld [vmem:[%s465_s1 + $0x18] sm:$0xff]  ;;  %v84_v40 = vsub.s32 %v81_v36, %v78_v38  ;;  %v91_v43 = vsub.s32 %v88_v37, %v78_v38  ;;  %v222_v5 = vld [vmem:[%s466_s3] sm:$0xff] }
   0x8   :  { %59 = vadd.xlane.f32.xlu1 %v58_v10  ;;  %v347_v31 = vpack.c.bf16 %v135_v30, %v134_v28  ;;  %v98_v48 = vsub.s32 %v95_v42, %v78_v38  ;;  %v42_v63 = vld [vmem:[#allocation2] sm:$0x3]  ;;  %339 = vmatpush3.msra.mxu1 %v222_v5 }
   0x9   :  { %47 = vadd.xlane.f32.xlu0 %v46_v11  ;;  %345 = vmatpush3.bf16.msra.mxu0 %v344_v29  ;;  %v315_v6 = vld [vmem:[%s467_s2] ss:$0 sm:$0xff] }
   0xa   :  { %346 = vmatprep.subr.bf16.mxu0 %v357_v25  ;;  %v317_v15 = vld [vmem:[%s468_s4] ss:$0 sm:$0xff] }
   0xc   :  { %62 = vadd.xlane.f32.xlu1 %v61_v16 }
   0xd   :  { %50 = vadd.xlane.f32.xlu0 %v49_v17  ;;  %348 = vmatpush3.bf16.msra.mxu0 %v347_v31 }
  0x10   :  { %65 = vadd.xlane.f32.xlu1 %v64_v22 }
  0x11   :  { %53 = vadd.xlane.f32.xlu0 %v52_v23 }
  0x91   :  { %v57_v34 = vpop.xlane.xlu1 %56 }
  0x92   :  { %v45_v35 = vpop.xlane.xlu0 %44  ;;  %v105_v51 = vrot.slane %v57_v34, %v79_v44 }
  0x93   :  { %v80_v53 = vrot.slane %v45_v35, %v79_v44 }
  0x95   :  { %v60_v39 = vpop.xlane.xlu1 %59 }
  0x96   :  { %v48_v41 = vpop.xlane.xlu0 %47  ;;  %v109_v46 = vrot.slane %v60_v39, %v84_v40 }
  0x97   :  { %v85_v49 = vrot.slane %v48_v41, %v84_v40 }
  0x98   :  { %v110_v55 = vsel %vm86_vm2, %v109_v46, %v105_v51 }
  0x99   :  { %v63_v45 = vpop.xlane.xlu1 %62  ;;  %v87_v58 = vsel %vm86_vm2, %v85_v49, %v80_v53 }
  0x9a   :  { %v51_v47 = vpop.xlane.xlu0 %50  ;;  %v114_v50 = vrot.slane %v63_v45, %v91_v43 }
  0x9b   :  { %v92_v52 = vrot.slane %v51_v47, %v91_v43 }
  0x9c   :  { %v115_v59 = vsel %vm93_vm3, %v114_v50, %v110_v55 }
  0x9d   :  { %v66_v54 = vpop.xlane.xlu1 %65  ;;  %v94_v61 = vsel %vm93_vm3, %v92_v52, %v87_v58 }
  0x9e   :  { %v119_v56 = vrot.slane %v66_v54, %v98_v48  ;;  %v54_v57 = vpop.xlane.xlu0 %53 }
  0x9f   :  { %v99_v60 = vrot.slane %v54_v57, %v98_v48 }
  0xa0   :  { %v120_v62 = vsel %vm100_vm4, %v119_v56, %v115_v59 }
  0xa1   :  { %v101_v0 = vsel %vm100_vm4, %v99_v60, %v94_v61 }
  0xa2   :  { %v122_v1 = vsel %vm121_vm5, %v120_v62, %v101_v0 }
  0xa3   :  { %v124_v2 = vadd.f32 %v122_v1, %v42_v63 }
  0xa5   :  { %126 = vst.msk [vmem:[#allocation2] sm:$0x3] %vm24_vm0, %v124_v2 }
  0xac   :  { %v130_v3 = vld [vmem:[#allocation2] sm:$0x3] }
  0xad   :  { %v131_v4 = vmul.f32 0.00390625, %v130_v3 }
  0xaf   :  { %336 = vmatmul.mubr.msk.f32.vlgmr.msra.gmra.mrb[0].mxu0 %vm143_vm6, %v131_v4 }
 0x182   :  { %v213_v7 = vpop.f32.mrb[0].mxu0 }
 0x183   :  { %v214_v8 = vadd.f32 %v315_v6, %v213_v7  ;;  %v337_v9 = vpop.f32.mrb[1].mxu0 }
 0x185   :  { %v217_v10 = vadd.f32 3.0, %v214_v8 }
 0x187   :  { %v218_v11 = vmax.f32 %v217_v10, 0.0 }
 0x189   :  { %v219_v12 = vmin.f32 %v218_v11, 6.0 }
 0x18b   :  { %v220_v13 = vmul.f32 %v219_v12, %v214_v8 }
 0x18d   :  { %v221_v14 = vmul.f32 0.16666667, %v220_v13 }
 0x18f   :  { %341 = vmatmul.mubr.msk.f32.vlgmr.msra.gmra.mrb[0].mxu1 %vm230_vm7, %v221_v14 }
 0x262   :  { %v300_v16 = vpop.f32.mrb[0].mxu1 }
 0x263   :  { %v301_v17 = vadd.f32 %v317_v15, %v300_v16  ;;  %v342_v18 = vpop.f32.mrb[1].mxu1 }
 0x265   :  { %v319_v19 = vmul.f32 -1.442695, %v301_v17 }
 0x267   :  { %352 = vpow2.f32 %v319_v19 }
 0x271   :  { %v353_v20 = vpop.eup %352 }
 0x272   :  { %v307_v21 = vadd.f32 1.0, %v353_v20 }
 0x274   :  { %354 = vrcp.f32 %v307_v21 }
 0x27e   :  { %v355_v22 = vpop.eup %354 }
 0x27f   :  { %310 = vst.msk [vmem:[%s469_s5] sm:$0x3] %vm24_vm0, %v355_v22 }

</bundles_post_ra>
